<compile_context>
chip_gen: v7x
topology: tpu7x:2x2x1
jax: 0.10.0
libtpu: 0.0.40
codegen_flags: <defaults>
</compile_context>

<pallas_src>
import functools

import jax
import jax.numpy as jnp
from jax.experimental import pallas as pl
from jax.experimental.pallas import tpu as pltpu

_LANES = 128
_SUBLANES = 8
_F_IN = 2      # linear1 input features
_HIDDEN = 3    # linear1 output features
_VMEM_LIMIT = 48 * 1024 * 1024   # <= physical VMEM on v5e/v6e (128 MiB) and v7x (64 MiB)


def _round_up(v, m):
    return ((v + m - 1) // m) * m


def _mlp_logits(params_ref, x0, x1, num_classes):
    """ReLU(W1 x + b1) -> ReLU(W2 h + b2), per-lane, FMA-friendly chains.

    All weights/biases are scalar reads from the packed SMEM vector; arithmetic is
    pure VPU (no MXU, no cross-lane ops).
    """
    h = []
    for j in range(_HIDDEN):
        w0 = params_ref[_F_IN * j + 0]
        w1 = params_ref[_F_IN * j + 1]
        b = params_ref[_F_IN * _HIDDEN + j]
        h.append(jnp.maximum(w0 * x0 + (w1 * x1 + b), 0.0))

    w2_off = _F_IN * _HIDDEN + _HIDDEN            # 9
    b2_off = w2_off + _HIDDEN * num_classes
    z = []
    for c in range(num_classes):
        acc = (params_ref[w2_off + _HIDDEN * c + _HIDDEN - 1] * h[_HIDDEN - 1]
               + params_ref[b2_off + c])
        for j in range(_HIDDEN - 2, -1, -1):
            acc = params_ref[w2_off + _HIDDEN * c + j] * h[j] + acc
        z.append(jnp.maximum(acc, 0.0))
    return z


def _refined_reciprocal(x):
    """EUP approximate reciprocal + one Newton step (~f32-exact, keeps 1e-5 tol)."""
    r = pl.reciprocal(x, approx=True)
    return r * (2.0 - x * r)


def _logreg_paired_kernel(params_ref, x_ref, out_ref):
    """num_classes == 2: native-layout in, native-layout out.

    x_ref:   (block_rows, 128) VMEM -- the flat (N, 2) input viewed as rows of 64
             samples: lane 2s = feature0 of sample s, lane 2s+1 = feature1.
    out_ref: (block_rows, 128) VMEM -- same interleaving for the 2 class probs.
    params_ref: (17,) SMEM -- w1 | b1 | w2 | b2 packed row-major.
    """
    t = x_ref[...]
    lane = jax.lax.broadcasted_iota(jnp.int32, t.shape, 1)
    is_even = (lane & 1) == 0

    # De-interleave features: at even lanes, t is x0 and roll(t, 127) is x1.
    # (Odd lanes compute bounded garbage that is dropped by the final select.)
    x1_at_even = pltpu.roll(t, shift=_LANES - 1, axis=1)
    z0, z1 = _mlp_logits(params_ref, t, x1_at_even, 2)

    # 2-class softmax == numerically stable sigmoid pair.
    d = z0 - z1
    e = jnp.exp(-jnp.abs(d))                      # in (0, 1]: never overflows
    inv = _refined_reciprocal(1.0 + e)
    p_hi = inv                                    # prob of the larger logit
    p_lo = e * inv                                # prob of the smaller logit
    d_ge = d >= 0.0
    p0 = jnp.where(d_ge, p_hi, p_lo)
    p1 = jnp.where(d_ge, p_lo, p_hi)

    # Re-interleave: even lane 2s <- p0[sample s], odd lane 2s+1 <- p1[sample s].
    out_ref[...] = jnp.where(is_even, p0, pltpu.roll(p1, shift=1, axis=1))


def _logreg_planes_kernel(params_ref, x_ref, out_ref, *, num_classes):
    """General num_classes: feature-major in, class-major out (lane-dense planes).

    x_ref:   (2, block_rows, 128) VMEM
    out_ref: (C, block_rows, 128) VMEM
    params_ref: (9 + 4*C,) SMEM
    """
    z = _mlp_logits(params_ref, x_ref[0], x_ref[1], num_classes)

    m = z[0]
    for c in range(1, num_classes):
        m = jnp.maximum(m, z[c])
    e = [jnp.exp(zc - m) for zc in z]
    s = e[0]
    for c in range(1, num_classes):
        s = s + e[c]
    inv_s = _refined_reciprocal(s)
    for c in range(num_classes):
        out_ref[c] = e[c] * inv_s


def _block_rows(rows_needed, target_rows, planes_per_row):
    """Sublane block size: multiple of 8, >= ~4 grid steps when possible, VMEM-bounded."""
    # Double-buffered I/O planes + ~8 live elementwise temporaries per row.
    bytes_per_row = (2 * planes_per_row + 8) * _LANES * 4
    budget = max(_SUBLANES,
                 ((_VMEM_LIMIT // 2) // bytes_per_row) // _SUBLANES * _SUBLANES)
    steps4 = max(_SUBLANES, _round_up(pl.cdiv(rows_needed, 4), _SUBLANES))
    return max(_SUBLANES, min(_round_up(target_rows, _SUBLANES), budget, steps4))


def _forward_two_class(params, x, n, target_rows):
    spr = _LANES // _F_IN                               # 64 samples per 128-lane row
    rows_needed = pl.cdiv(n, spr)
    br = _block_rows(rows_needed, target_rows, planes_per_row=2)
    n_rows = _round_up(rows_needed, br)
    n_pad = n_rows * spr

    xf = jnp.asarray(x, jnp.float32)
    if n_pad != n:
        xf = jnp.pad(xf, ((0, n_pad - n), (0, 0)))      # only when not block-aligned
    x2 = xf.reshape(n_rows, _LANES)                     # contiguous view: no HBM pass

    out = pl.pallas_call(
        _logreg_paired_kernel,
        out_shape=jax.ShapeDtypeStruct((n_rows, _LANES), jnp.float32),
        grid=(n_rows // br,),
        in_specs=[
            pl.BlockSpec(memory_space=pltpu.MemorySpace.SMEM),      # packed params
            pl.BlockSpec((br, _LANES), lambda i: (i, 0)),
        ],
        out_specs=pl.BlockSpec((br, _LANES), lambda i: (i, 0)),
        compiler_params=pltpu.CompilerParams(
            dimension_semantics=("parallel",),
            vmem_limit_bytes=_VMEM_LIMIT),
    )(params, x2)

    return out.reshape(n_pad, _F_IN)[:n]                # contiguous view + pad trim


def _forward_general(params, x, n, num_classes, target_rows):
    rows_needed = pl.cdiv(n, _LANES)
    br = _block_rows(rows_needed, target_rows, planes_per_row=_F_IN + num_classes)
    n_rows = _round_up(rows_needed, br)
    n_pad = n_rows * _LANES

    xf = jnp.asarray(x, jnp.float32)
    if n_pad != n:
        xf = jnp.pad(xf, ((0, n_pad - n), (0, 0)))
    x3 = xf.T.reshape(_F_IN, n_rows, _LANES)            # feature-major, lane-dense planes

    kernel = functools.partial(_logreg_planes_kernel, num_classes=num_classes)
    out3 = pl.pallas_call(
        kernel,
        out_shape=jax.ShapeDtypeStruct((num_classes, n_rows, _LANES), jnp.float32),
        grid=(n_rows // br,),
        in_specs=[
            pl.BlockSpec(memory_space=pltpu.MemorySpace.SMEM),
            pl.BlockSpec((_F_IN, br, _LANES), lambda i: (0, i, 0)),
        ],
        out_specs=pl.BlockSpec((num_classes, br, _LANES), lambda i: (0, i, 0)),
        compiler_params=pltpu.CompilerParams(
            dimension_semantics=("parallel",),
            vmem_limit_bytes=_VMEM_LIMIT),
    )(params, x3)

    return out3.reshape(num_classes, n_pad)[:, :n].T


def simple_logistic_regression(x, w1, b1, w2, b2, *, block_rows=2048):
    """Forward pass of SimpleLogisticRegression.

    x: (N, 2); w1: (3, 2); b1: (3,); w2: (C, 3); b2: (C,)  (PyTorch Linear layouts)
    Returns (N, C) float32 softmax probabilities.
    """
    n = x.shape[0]
    num_classes = w2.shape[0]

    # Pack every parameter (9 + 4*C scalars) into one SMEM-resident vector.
    params = jnp.concatenate([
        jnp.asarray(w1, jnp.float32).reshape(-1),   # w1[j,k] -> idx 2j + k
        jnp.asarray(b1, jnp.float32).reshape(-1),   # b1[j]   -> idx 6 + j
        jnp.asarray(w2, jnp.float32).reshape(-1),   # w2[c,j] -> idx 9 + 3c + j
        jnp.asarray(b2, jnp.float32).reshape(-1),   # b2[c]   -> idx 9 + 3C + c
    ])

    # TODO(synk): optional bfloat16 I/O to halve HBM traffic on v5e/v6e once the
    # 1e-5 output tolerance can be relaxed (math would stay f32 in-kernel).
    if num_classes == 2:
        # Paired rows hold 64 samples each -> 2x rows keeps samples/step identical
        # to the class-plane path.
        return _forward_two_class(params, x, n, target_rows=2 * block_rows)
    return _forward_general(params, x, n, num_classes, target_rows=block_rows)


def _reference(x, w1, b1, w2, b2):
    h = jnp.maximum(x @ w1.T + b1, 0.0)
    z = jnp.maximum(h @ w2.T + b2, 0.0)
    return jax.nn.softmax(z, axis=1)


if __name__ == "__main__":
    key = jax.random.PRNGKey(0)
    kx, k1, kb1, k2, kb2, kx3, kw3, kb3 = jax.random.split(key, 8)

    # Shared Linear(2, 3) parameters (PyTorch layouts: weight (out, in), bias (out,)).
    w1 = jax.random.uniform(k1, (3, 2), minval=-0.5, maxval=0.5, dtype=jnp.float32)
    b1 = jax.random.uniform(kb1, (3,), minval=-0.5, maxval=0.5, dtype=jnp.float32)

    # Case 1: default num_classes=2 -> fused interleaved kernel (no wrapper transposes).
    batch = 8
    x = jax.random.normal(kx, (batch, 2), dtype=jnp.float32)
    w2 = jax.random.uniform(k2, (2, 3), minval=-0.5, maxval=0.5, dtype=jnp.float32)
    b2 = jax.random.uniform(kb2, (2,), minval=-0.5, maxval=0.5, dtype=jnp.float32)
    out = jax.block_until_ready(simple_logistic_regression(x, w1, b1, w2, b2))
    ref = _reference(x, w1, b1, w2, b2)
    assert out.shape == (batch, 2), out.shape
    assert jnp.allclose(out, ref, atol=1e-5, rtol=1e-5)
    assert jnp.allclose(jnp.sum(out, axis=1), 1.0, atol=1e-5)

    # Case 2: num_classes=3 -> general class-plane kernel (also exercises padding).
    batch3 = 300
    x3 = jax.random.normal(kx3, (batch3, 2), dtype=jnp.float32)
    w23 = jax.random.uniform(kw3, (3, 3), minval=-0.5, maxval=0.5, dtype=jnp.float32)
    b23 = jax.random.uniform(kb3, (3,), minval=-0.5, maxval=0.5, dtype=jnp.float32)
    out3 = jax.block_until_ready(simple_logistic_regression(x3, w1, b1, w23, b23))
    ref3 = _reference(x3, w1, b1, w23, b23)
    assert out3.shape == (batch3, 3), out3.shape
    assert jnp.allclose(out3, ref3, atol=1e-5, rtol=1e-5)
    assert jnp.allclose(jnp.sum(out3, axis=1), 1.0, atol=1e-5)

    print("KERNEL_OK")
</pallas_src>

<mosaic_0001>
module attributes {stable_mosaic.version = 11 : i64} {
  func.func @_logreg_paired_kernel(%arg0: i32, %arg1: memref<17xf32, #tpu.memory_space<smem>>, %arg2: memref<8x128xf32, #tpu.memory_space<vmem>>, %arg3: memref<8x128xf32, #tpu.memory_space<vmem>>) attributes {dimension_semantics = [#tpu.dimension_semantics<parallel>], iteration_bounds = array<i64: 1>, scalar_prefetch = 0 : i64, scratch_operands = 0 : i64, tpu.core_type = #tpu.core_type<tc>, window_params = [{transform_indices = @transform_0, window_bounds = array<i64: 17>}, {transform_indices = @transform_1, window_bounds = array<i64: 8, 128>}, {transform_indices = @transform_2, window_bounds = array<i64: 8, 128>}]} {
    %c0 = arith.constant 0 : index
    %c0_0 = arith.constant 0 : index
    %0 = vector.load %arg2[%c0, %c0_0] : memref<8x128xf32, #tpu.memory_space<vmem>>, vector<8x128xf32>
    %1 = tpu.iota {dimensions = array<i32: 1>} : vector<8x128xi32>
    %c1_i32 = arith.constant 1 : i32
    %2 = vector.broadcast %c1_i32 : i32 to vector<8x128xi32>
    %3 = arith.andi %1, %2 : vector<8x128xi32>
    %c0_i32 = arith.constant 0 : i32
    %4 = vector.broadcast %c0_i32 : i32 to vector<8x128xi32>
    %5 = arith.cmpi eq, %3, %4 : vector<8x128xi32>
    %c127_i32 = arith.constant 127 : i32
    %6 = tpu.dynamic_rotate %0 by %c127_i32 dim 1 : vector<8x128xf32>, i32 -> vector<8x128xf32>
    %c0_1 = arith.constant 0 : index
    %7 = memref.load %arg1[%c0_1] : memref<17xf32, #tpu.memory_space<smem>>
    %c1 = arith.constant 1 : index
    %8 = memref.load %arg1[%c1] : memref<17xf32, #tpu.memory_space<smem>>
    %c6 = arith.constant 6 : index
    %9 = memref.load %arg1[%c6] : memref<17xf32, #tpu.memory_space<smem>>
    %10 = vector.broadcast %7 : f32 to vector<8x128xf32>
    %11 = arith.mulf %10, %0 : vector<8x128xf32>
    %12 = vector.broadcast %8 : f32 to vector<8x128xf32>
    %13 = arith.mulf %12, %6 : vector<8x128xf32>
    %14 = vector.broadcast %9 : f32 to vector<8x128xf32>
    %15 = arith.addf %13, %14 : vector<8x128xf32>
    %16 = arith.addf %11, %15 : vector<8x128xf32>
    %cst = arith.constant 0.000000e+00 : f32
    %17 = vector.broadcast %cst : f32 to vector<8x128xf32>
    %18 = arith.maximumf %16, %17 : vector<8x128xf32>
    %c2 = arith.constant 2 : index
    %19 = memref.load %arg1[%c2] : memref<17xf32, #tpu.memory_space<smem>>
    %c3 = arith.constant 3 : index
    %20 = memref.load %arg1[%c3] : memref<17xf32, #tpu.memory_space<smem>>
    %c7 = arith.constant 7 : index
    %21 = memref.load %arg1[%c7] : memref<17xf32, #tpu.memory_space<smem>>
    %22 = vector.broadcast %19 : f32 to vector<8x128xf32>
    %23 = arith.mulf %22, %0 : vector<8x128xf32>
    %24 = vector.broadcast %20 : f32 to vector<8x128xf32>
    %25 = arith.mulf %24, %6 : vector<8x128xf32>
    %26 = vector.broadcast %21 : f32 to vector<8x128xf32>
    %27 = arith.addf %25, %26 : vector<8x128xf32>
    %28 = arith.addf %23, %27 : vector<8x128xf32>
    %cst_2 = arith.constant 0.000000e+00 : f32
    %29 = vector.broadcast %cst_2 : f32 to vector<8x128xf32>
    %30 = arith.maximumf %28, %29 : vector<8x128xf32>
    %c4 = arith.constant 4 : index
    %31 = memref.load %arg1[%c4] : memref<17xf32, #tpu.memory_space<smem>>
    %c5 = arith.constant 5 : index
    %32 = memref.load %arg1[%c5] : memref<17xf32, #tpu.memory_space<smem>>
    %c8 = arith.constant 8 : index
    %33 = memref.load %arg1[%c8] : memref<17xf32, #tpu.memory_space<smem>>
    %34 = vector.broadcast %31 : f32 to vector<8x128xf32>
    %35 = arith.mulf %34, %0 : vector<8x128xf32>
    %36 = vector.broadcast %32 : f32 to vector<8x128xf32>
    %37 = arith.mulf %36, %6 : vector<8x128xf32>
    %38 = vector.broadcast %33 : f32 to vector<8x128xf32>
    %39 = arith.addf %37, %38 : vector<8x128xf32>
    %40 = arith.addf %35, %39 : vector<8x128xf32>
    %cst_3 = arith.constant 0.000000e+00 : f32
    %41 = vector.broadcast %cst_3 : f32 to vector<8x128xf32>
    %42 = arith.maximumf %40, %41 : vector<8x128xf32>
    %c11 = arith.constant 11 : index
    %43 = memref.load %arg1[%c11] : memref<17xf32, #tpu.memory_space<smem>>
    %44 = vector.broadcast %43 : f32 to vector<8x128xf32>
    %45 = arith.mulf %44, %42 : vector<8x128xf32>
    %c15 = arith.constant 15 : index
    %46 = memref.load %arg1[%c15] : memref<17xf32, #tpu.memory_space<smem>>
    %47 = vector.broadcast %46 : f32 to vector<8x128xf32>
    %48 = arith.addf %45, %47 : vector<8x128xf32>
    %c10 = arith.constant 10 : index
    %49 = memref.load %arg1[%c10] : memref<17xf32, #tpu.memory_space<smem>>
    %50 = vector.broadcast %49 : f32 to vector<8x128xf32>
    %51 = arith.mulf %50, %30 : vector<8x128xf32>
    %52 = arith.addf %51, %48 : vector<8x128xf32>
    %c9 = arith.constant 9 : index
    %53 = memref.load %arg1[%c9] : memref<17xf32, #tpu.memory_space<smem>>
    %54 = vector.broadcast %53 : f32 to vector<8x128xf32>
    %55 = arith.mulf %54, %18 : vector<8x128xf32>
    %56 = arith.addf %55, %52 : vector<8x128xf32>
    %cst_4 = arith.constant 0.000000e+00 : f32
    %57 = vector.broadcast %cst_4 : f32 to vector<8x128xf32>
    %58 = arith.maximumf %56, %57 : vector<8x128xf32>
    %c14 = arith.constant 14 : index
    %59 = memref.load %arg1[%c14] : memref<17xf32, #tpu.memory_space<smem>>
    %60 = vector.broadcast %59 : f32 to vector<8x128xf32>
    %61 = arith.mulf %60, %42 : vector<8x128xf32>
    %c16 = arith.constant 16 : index
    %62 = memref.load %arg1[%c16] : memref<17xf32, #tpu.memory_space<smem>>
    %63 = vector.broadcast %62 : f32 to vector<8x128xf32>
    %64 = arith.addf %61, %63 : vector<8x128xf32>
    %c13 = arith.constant 13 : index
    %65 = memref.load %arg1[%c13] : memref<17xf32, #tpu.memory_space<smem>>
    %66 = vector.broadcast %65 : f32 to vector<8x128xf32>
    %67 = arith.mulf %66, %30 : vector<8x128xf32>
    %68 = arith.addf %67, %64 : vector<8x128xf32>
    %c12 = arith.constant 12 : index
    %69 = memref.load %arg1[%c12] : memref<17xf32, #tpu.memory_space<smem>>
    %70 = vector.broadcast %69 : f32 to vector<8x128xf32>
    %71 = arith.mulf %70, %18 : vector<8x128xf32>
    %72 = arith.addf %71, %68 : vector<8x128xf32>
    %cst_5 = arith.constant 0.000000e+00 : f32
    %73 = vector.broadcast %cst_5 : f32 to vector<8x128xf32>
    %74 = arith.maximumf %72, %73 : vector<8x128xf32>
    %75 = arith.subf %58, %74 : vector<8x128xf32>
    %76 = math.absf %75 : vector<8x128xf32>
    %cst_6 = arith.constant 0.000000e+00 : f32
    %77 = vector.broadcast %cst_6 : f32 to vector<8x128xf32>
    %78 = arith.subf %77, %76 : vector<8x128xf32>
    %79 = math.exp %78 : vector<8x128xf32>
    %cst_7 = arith.constant 1.000000e+00 : f32
    %80 = vector.broadcast %cst_7 : f32 to vector<8x128xf32>
    %81 = arith.addf %80, %79 : vector<8x128xf32>
    %82 = tpu.reciprocal %81 {approx = true} : vector<8x128xf32> -> vector<8x128xf32>
    %83 = arith.mulf %81, %82 : vector<8x128xf32>
    %cst_8 = arith.constant 2.000000e+00 : f32
    %84 = vector.broadcast %cst_8 : f32 to vector<8x128xf32>
    %85 = arith.subf %84, %83 : vector<8x128xf32>
    %86 = arith.mulf %82, %85 : vector<8x128xf32>
    %87 = arith.mulf %79, %86 : vector<8x128xf32>
    %cst_9 = arith.constant 0.000000e+00 : f32
    %88 = vector.broadcast %cst_9 : f32 to vector<8x128xf32>
    %89 = arith.cmpf oge, %75, %88 : vector<8x128xf32>
    %90 = arith.select %89, %86, %87 : vector<8x128xi1>, vector<8x128xf32>
    %91 = arith.select %89, %87, %86 : vector<8x128xi1>, vector<8x128xf32>
    %c1_i32_10 = arith.constant 1 : i32
    %92 = tpu.dynamic_rotate %91 by %c1_i32_10 dim 1 : vector<8x128xf32>, i32 -> vector<8x128xf32>
    %93 = arith.select %5, %90, %92 : vector<8x128xi1>, vector<8x128xf32>
    %c0_11 = arith.constant 0 : index
    %c0_12 = arith.constant 0 : index
    %94 = vector.load %arg3[%c0_11, %c0_12] : memref<8x128xf32, #tpu.memory_space<vmem>>, vector<8x128xf32>
    tpu.vector_store %arg3[%c0_11, %c0_12], %93 {strides = array<i32>} : memref<8x128xf32, #tpu.memory_space<vmem>>, vector<8x128xf32>,
    return
  }
  func.func @transform_0(%arg0: i32) -> i32 {
    %c0_i32 = arith.constant 0 : i32
    %c0_i32_0 = arith.constant 0 : i32
    return %c0_i32 : i32
  }
  func.func @transform_1(%arg0: i32) -> (i32, i32) {
    %c0_i32 = arith.constant 0 : i32
    %c0_i32_0 = arith.constant 0 : i32
    return %arg0, %c0_i32 : i32, i32
  }
  func.func @transform_2(%arg0: i32) -> (i32, i32) {
    %c0_i32 = arith.constant 0 : i32
    %c0_i32_0 = arith.constant 0 : i32
    return %arg0, %c0_i32 : i32, i32
  }
}

</mosaic_0001>

<bundles_post_ra>
// kernel: tpu_custom_call.1
= control target key start
LH: loop header
LB: loop body
LE: loop exit
PB: predicated region body
PF: predicated region fallthrough
CT: control target
= control target key end

     0   :  { %7 = vsyncpa [#allocation5], 0  ;;  %s292_s0 = inlined_call_operand.hbm [shape: f32[17], index: 0, kind: input, shape index: {}]   ;;  %s293_s1 = inlined_call_operand.hbm [shape: f32[8,128], index: 1, kind: input, shape index: {}]   ;;  %s294_s2 = inlined_call_operand.hbm [shape: f32[8,128], index: 2, kind: output, shape index: {}]  }
   0x1   :  { %8 = vsyncpa [#allocation3], 0 }
   0x2   :  { %9 = vsyncpa [#allocation4], 0  ;;  %s164_s11 = scalar_lea.hbm %s292_s0, 16 }
   0x3   :  { %p165_p0 = scmp.ne.s32.totalorder %s292_s0, %s164_s11  ;;  %p168_p1 = scmp.lt.u32.totalorder %s164_s11, %s292_s0 }
   0x5   :  { %p170_p2 = pnand %p168_p1, %p165_p0 }
   0x7   :  { %173 = shalt.err (!%p170_p2)
}
   0x8   :  { %s224_s16 = smov [#allocation2]   ;;  %s225_s19 = smov [#allocation6]  }
   0x9   :  { %17 = dma.hbm_to_smem %s292_s0, 16, %s224_s16, [#allocation5]  }
   0xa   :  { %s24_s20 = sshll.u32 %s225_s19, 4  ;;  %s174_s23 = scalar_lea.hbm %s293_s1, 128  ;;  %s25_s20 = int_to_ptr.vmem [resolvable:$true] %s24_s20 }
   0xb   :  { %p175_p3 = scmp.ne.s32.totalorder %s293_s1, %s174_s23  ;;  %p178_p4 = scmp.lt.u32.totalorder %s174_s23, %s293_s1 }
   0xd   :  { %p180_p5 = pnand %p178_p4, %p175_p3 }
   0xf   :  { %183 = shalt.err (!%p180_p5)
}
  0x10   :  { %s184_s28 = scalar_lea.vmem %s25_s20, 128  ;;  %p189_p7 = scmp.lt.s32.totalorder %s25_s20, %s25_s20 }
  0x11   :  { %p185_p6 = scmp.ne.s32.totalorder %s25_s20, %s184_s28  ;;  %p190_p8 = scmp.lt.s32.totalorder %s184_s28, %s184_s28 }
  0x13   :  { %p191_p9 = por %p190_p8, %p189_p7 }
  0x15   :  { %p192_p10 = pnand %p191_p9, %p185_p6 }
  0x17   :  { %195 = shalt.err (!%p192_p10)
}
  0x18   :  { %27 = dma.hbm_to_vmem [thread:$0]  %s293_s1, 128, %s25_s20, [#allocation3]  }
  0x19   :  { %218 = dma.done.wait [#allocation5], 16  }
  0x1a   :  { %219 = vsyncadd [#allocation5], 4294967280 }
  0x1b   :  { %220 = dma.done.wait [#allocation3], 128  }
  0x1c   :  { %221 = vsyncadd [#allocation3], 4294967168 }
  0x1d   :  { %34 = sfence }
  0x1e   :  { %v35_v0 = vld [vmem:[#allocation6] sm:$0xff]  ;;  %s226_s30 = smov 127   ;;  %s42_s3 = sld [smem:[#allocation2]]  ;;  %v36_v61 = vlaneseq }
  0x1f   :  { %40 = vrot.lane.b32.xlu0 %v35_v0, %s226_s30  ;;  %s141_s4 = sld [smem:[#allocation2 + $0x2]]  ;;  %s144_s5 = sld [smem:[#allocation2 + $0x4]] }
  0x20   :  { %s139_s6 = sld [smem:[#allocation2 + $0x1]]  ;;  %s142_s7 = sld [smem:[#allocation2 + $0x3]]  ;;  %v37_v62 = vand.u32 127, %v36_v61 }
  0x21   :  { %s145_s8 = sld [smem:[#allocation2 + $0x5]]  ;;  %s140_s9 = sld [smem:[#allocation2 + $0x6]] }
  0x22   :  { %s143_s10 = sld [smem:[#allocation2 + $0x7]]  ;;  %s146_s11 = sld [smem:[#allocation2 + $0x8]]  ;;  %v38_v63 = vand.u32 1, %v37_v62 }
  0x23   :  { %s268_s1 = sld [smem:[#allocation2 + $0xb]]  ;;  %s270_s12 = sld [smem:[#allocation2 + $0xe]] }
  0x24   :  { %v45_v1 = vstv %s42_s3  ;;  %s272_s13 = sld [smem:[#allocation2 + $0xf]]  ;;  %s274_s14 = sld [smem:[#allocation2 + $0xa]]  ;;  %vm39_vm1 = vcmp.eq.s32.totalorder %v38_v63, 0 }
  0x25   :  { %v56_v2 = vstv %s141_s4  ;;  %v67_v3 = vstv %s144_s5  ;;  %v46_v7 = vmul.f32 %v45_v1, %v35_v0  ;;  %s152_s15 = sld [smem:[#allocation2 + $0x10]]  ;;  %s153_s16 = sld [smem:[#allocation2 + $0xd]] }
  0x26   :  { %v47_v4 = vstv %s139_s6  ;;  %v58_v5 = vstv %s142_s7  ;;  %v57_v8 = vmul.f32 %v56_v2, %v35_v0  ;;  %v68_v13 = vmul.f32 %v67_v3, %v35_v0  ;;  %s150_s17 = sld [smem:[#allocation2 + $0x9]]  ;;  %s154_s18 = sld [smem:[#allocation2 + $0xc]] }
  0x27   :  { %v69_v6 = vstv %s145_s8  ;;  %v49_v9 = vstv %s140_s9  ;;  %s227_s19 = smov 1   ;;  %s228_s20 = smov [#allocation7]  }
  0x28   :  { %v60_v10 = vstv %s143_s10  ;;  %v71_v11 = vstv %s146_s11  ;;  %s129_s21 = sshll.u32 %s228_s20, 4  ;;  %s130_s21 = int_to_ptr.vmem [resolvable:$true] %s129_s21 }
  0x29   :  { %v76_v23 = vstv %s268_s1  ;;  %v91_v24 = vstv %s270_s12  ;;  %s196_s22 = scalar_lea.vmem %s130_s21, 128  ;;  %p201_p12 = scmp.lt.s32.totalorder %s130_s21, %s130_s21 }
  0x2a   :  { %v79_v27 = vstv %s272_s13  ;;  %v82_v28 = vstv %s274_s14  ;;  %p197_p11 = scmp.ne.s32.totalorder %s130_s21, %s196_s22  ;;  %p202_p13 = scmp.lt.s32.totalorder %s196_s22, %s196_s22 }
  0x2b   :  { %v94_v29 = vstv %s152_s15  ;;  %v97_v30 = vstv %s153_s16 }
  0x2c   :  { %v86_v34 = vstv %s150_s17  ;;  %v101_v35 = vstv %s154_s18  ;;  %p203_p0 = por %p202_p13, %p201_p12 }
  0x2e   :  { %p204_p1 = pnand %p203_p0, %p197_p11 }
  0x91   :  { %v41_v12 = vpop.permute.xlu0 %40 }
  0x92   :  { %v48_v14 = vmul.f32 %v47_v4, %v41_v12  ;;  %v59_v15 = vmul.f32 %v58_v5, %v41_v12  ;;  %v70_v16 = vmul.f32 %v69_v6, %v41_v12 }
  0x94   :  { %v50_v17 = vadd.f32 %v49_v9, %v48_v14  ;;  %v61_v18 = vadd.f32 %v60_v10, %v59_v15  ;;  %v72_v19 = vadd.f32 %v71_v11, %v70_v16 }
  0x96   :  { %v51_v20 = vadd.f32 %v50_v17, %v46_v7  ;;  %v62_v21 = vadd.f32 %v61_v18, %v57_v8  ;;  %v73_v22 = vadd.f32 %v72_v19, %v68_v13 }
  0x98   :  { %v63_v25 = vmax.f32 %v62_v21, 0.0  ;;  %v74_v26 = vmax.f32 %v73_v22, 0.0  ;;  %v52_v31 = vmax.f32 %v51_v20, 0.0 }
  0x9a   :  { %v77_v32 = vmul.f32 %v76_v23, %v74_v26  ;;  %v92_v33 = vmul.f32 %v91_v24, %v74_v26  ;;  %v83_v37 = vmul.f32 %v82_v28, %v63_v25  ;;  %v98_v39 = vmul.f32 %v97_v30, %v63_v25 }
  0x9b   :  { %v87_v40 = vmul.f32 %v86_v34, %v52_v31  ;;  %v102_v41 = vmul.f32 %v101_v35, %v52_v31 }
  0x9c   :  { %v80_v36 = vadd.f32 %v79_v27, %v77_v32  ;;  %v95_v38 = vadd.f32 %v94_v29, %v92_v33 }
  0x9e   :  { %v84_v42 = vadd.f32 %v83_v37, %v80_v36  ;;  %v99_v43 = vadd.f32 %v98_v39, %v95_v38 }
  0xa0   :  { %v88_v44 = vadd.f32 %v87_v40, %v84_v42  ;;  %v103_v45 = vadd.f32 %v102_v41, %v99_v43 }
  0xa2   :  { %v89_v46 = vmax.f32 %v88_v44, 0.0  ;;  %v104_v47 = vmax.f32 %v103_v45, 0.0 }
  0xa4   :  { %v105_v48 = vsub.f32 %v89_v46, %v104_v47 }
  0xa6   :  { %v106_v49 = vand.u32 2147483647, %v105_v48  ;;  %vm116_vm0 = vcmp.ge.f32.partialorder %v105_v48, 0.0 }
  0xa8   :  { %v107_v50 = vsub.f32 0.0, %v106_v49 }
  0xaa   :  { %v108_v51 = vmul.f32 1.442695, %v107_v50 }
  0xac   :  { %160 = vpow2.f32 %v108_v51 }
  0xb6   :  { %v161_v52 = vpop.eup %160 }
  0xb7   :  { %v110_v53 = vadd.f32 1.0, %v161_v52 }
  0xb9   :  { %162 = vrcp.f32 %v110_v53 }
  0xc3   :  { %v163_v54 = vpop.eup %162 }
  0xc4   :  { %v112_v55 = vmul.f32 %v163_v54, %v110_v53 }
  0xc6   :  { %v113_v56 = vsub.f32 2.0, %v112_v55 }
  0xc8   :  { %v114_v57 = vmul.f32 %v163_v54, %v113_v56 }
  0xca   :  { %v115_v58 = vmul.f32 %v161_v52, %v114_v57 }
  0xcc   :  { %v118_v59 = vsel %vm116_vm0, %v115_v58, %v114_v57  ;;  %v117_v60 = vsel %vm116_vm0, %v114_v57, %v115_v58 }
  0xcd   :  { %119 = vrot.lane.b32.xlu0 %v118_v59, %s227_s19 }
 0x13f   :  { %v120_v0 = vpop.permute.xlu0 %119 }
 0x140   :  { %v121_v1 = vsel %vm39_vm1, %v117_v60, %v120_v0 }
 0x141   :  { %122 = vst [vmem:[#allocation7] sm:$0xff] %v121_v1 }
 0x142   :  { %207 = shalt.err (!%p204_p1)
}
 0x143   :  { %s208_s25 = scalar_lea.hbm %s294_s2, 128 }
 0x144   :  { %p209_p2 = scmp.ne.s32.totalorder %s294_s2, %s208_s25  ;;  %p212_p3 = scmp.lt.u32.totalorder %s208_s25, %s294_s2 }
 0x146   :  { %p214_p4 = pnand %p212_p3, %p209_p2 }
 0x148   :  { %217 = shalt.err (!%p214_p4)
}
 0x149   :  { %132 = dma.vmem_to_hbm [thread:$0]  %s130_s21, 128, %s294_s2, [#allocation4]  }
 0x14a   :  { %222 = dma.done.wait [#allocation4], 128  }
 0x14b   :  { %223 = vsyncadd [#allocation4], 4294967168 }
 0x14c   :  { %136 = vsyncpa [#allocation3], 1 }
 0x14d   :  { %137 = vsyncpa [#allocation4], 1 }
 0x14e   :  { %138 = vsyncpa [#allocation5], 1 }

</bundles_post_ra>
